<compile_context>
chip_gen: v7x
topology: tpu7x:2x2x1
jax: 0.10.0
libtpu: 0.0.40
codegen_flags: <defaults>
</compile_context>

<pallas_src>
import math

import jax
import jax.numpy as jnp
import numpy as np
from jax.experimental import pallas as pl
from jax.experimental.pallas import tpu as pltpu

LOG_STD_MIN, LOG_STD_MAX = -20.0, 2.0
_HALF_LOG_2PI = 0.5 * math.log(2.0 * math.pi)
_LOG_2 = math.log(2.0)


# ----------------------------------------------------------------------------
# Kernels
# ----------------------------------------------------------------------------
def _actor_train_kernel(obs_ref, eps_ref,
                        w1_ref, b1_ref, w2_ref, b2_ref, w3_ref, b3_ref,
                        out_ref):
    H = b2_ref.shape[1]          # hidden width (lane offset of the log_std cols)
    A = eps_ref.shape[1]         # action dim

    # MLP trunk: bf16 MXU operands, f32 accumulation, f32 bias/ReLU (no bf16 VPU
    # math -- v5e-safe).
    x = obs_ref[...].astype(jnp.bfloat16)
    h = jnp.dot(x, w1_ref[...], preferred_element_type=jnp.float32)
    h = jnp.maximum(h + b1_ref[...], 0.0)
    h = jnp.dot(h.astype(jnp.bfloat16), w2_ref[...], preferred_element_type=jnp.float32)
    h = jnp.maximum(h + b2_ref[...], 0.0)

    # Fused head: single (H, H+A) RHS.  mean lives in lanes [0, A),
    # log_std in lanes [H, H+A) -> both slices are vreg-column aligned.
    ho = jnp.dot(h.astype(jnp.bfloat16), w3_ref[...],
                 preferred_element_type=jnp.float32) + b3_ref[...]
    mean = ho[:, :A]
    log_std = jnp.clip(ho[:, H:H + A], LOG_STD_MIN, LOG_STD_MAX)
    std = jnp.exp(log_std)

    eps = eps_ref[...]
    pre_tanh = mean + std * eps
    action = jnp.tanh(pre_tanh)

    # Normal(mean, std).log_prob(pre_tanh): z == eps exactly (pre_tanh is built
    # as mean + std*eps) -> no divide, no cancellation.
    normal_lp = -0.5 * eps * eps - log_std - _HALF_LOG_2PI
    # 2*log2 + logsigmoid(2x) + logsigmoid(-2x) == 2*(log2 - x - softplus(-2x)).
    log_det = 2.0 * (_LOG_2 - pre_tanh - jnp.logaddexp(0.0, -2.0 * pre_tanh))
    log_prob = jnp.sum(normal_lp - log_det, axis=1, keepdims=True)

    # Single lane-contiguous store: lanes [0,A) = action, lane A = log_prob.
    out_ref[...] = jnp.concatenate([action, log_prob], axis=1).astype(out_ref.dtype)


def _actor_eval_kernel(obs_ref,
                       w1_ref, b1_ref, w2_ref, b2_ref, w3m_ref, b3m_ref,
                       action_ref):
    x = obs_ref[...].astype(jnp.bfloat16)
    h = jnp.dot(x, w1_ref[...], preferred_element_type=jnp.float32)
    h = jnp.maximum(h + b1_ref[...], 0.0)
    h = jnp.dot(h.astype(jnp.bfloat16), w2_ref[...], preferred_element_type=jnp.float32)
    h = jnp.maximum(h + b2_ref[...], 0.0)
    mean = jnp.dot(h.astype(jnp.bfloat16), w3m_ref[...],
                   preferred_element_type=jnp.float32) + b3m_ref[...]
    action_ref[...] = jnp.tanh(mean).astype(action_ref.dtype)


# ----------------------------------------------------------------------------
# Wrapper
# ----------------------------------------------------------------------------
def _choose_batch_tile(batch, max_tile=4096, min_blocks=2):
    """Pick the batch tile TB.

    * Large tiles amortize the ~0.35 us per-grid-step pipeline overhead
      (VMEM is nowhere near a constraint at these shapes).
    * For batch >= 16 the batch is split into at least `min_blocks` balanced,
      8-aligned blocks so the 'parallel' batch axis keeps both v7x TensorCores
      busy (never collapse to grid=(1,) on large batches).
    """
    if batch < 16:
        return batch                                   # full-extent block
    n_blocks = max(min_blocks, -(-batch // max_tile))  # cdiv
    tb = -(-batch // n_blocks)
    tb = ((tb + 7) // 8) * 8                           # sublane (8) alignment
    return min(tb, ((batch + 7) // 8) * 8)


def actor_forward(obs, kparams, eps=None, training=True, *, max_batch_tile=4096):
    """Actor forward pass in a single Pallas kernel (train or eval variant).

    obs:      (B, state_dim) float32
    kparams:  dict from pack_kernel_params(): bf16 weights w1/w2/w3_head/w3_mean,
              f32 biases b1/b2/b3_head/b3_mean (head fused with lane-128 offset).
    eps:      (B, A) standard-normal noise, required when training=True.
    Returns (action, log_prob); log_prob is None when training=False.
    """
    obs = jnp.asarray(obs, jnp.float32)
    B, S = obs.shape
    H = kparams["b2"].shape[1]
    A = kparams["b3_mean"].shape[1]

    TB = _choose_batch_tile(B, max_batch_tile)
    grid = (pl.cdiv(B, TB),)

    def batched(cols):
        return pl.BlockSpec((TB, cols), lambda i: (i, 0))

    # Weights/biases: constant index_map -> Pallas keeps them VMEM-resident and
    # does not re-issue their copies after the first grid step.  Total footprint
    # is < 100 KiB, so single-buffering them (pl.Buffered(1)) is not worth the
    # extra lowering constraint and is intentionally omitted.
    def resident(arr):
        return pl.BlockSpec(arr.shape, lambda i: (0, 0))

    cparams = pltpu.CompilerParams(dimension_semantics=("parallel",))

    def nbytes(*arrays):
        return int(sum(a.size * a.dtype.itemsize for a in arrays))

    if training:
        if eps is None:
            raise ValueError("training=True requires standard-normal noise `eps` of shape (B, A)")
        eps = jnp.asarray(eps, jnp.float32)

        w_args = (kparams["w1"], kparams["b1"], kparams["w2"], kparams["b2"],
                  kparams["w3_head"], kparams["b3_head"])

        flops = 2 * B * (S * H + H * H + H * (H + A)) + 16 * B * A
        transcendentals = 4 * B * A  # exp(log_std), tanh, exp+log in softplus
        bytes_accessed = nbytes(obs, eps, *w_args) + B * (A + 1) * 4

        packed = pl.pallas_call(
            _actor_train_kernel,
            grid=grid,
            in_specs=[batched(S), batched(A)] + [resident(a) for a in w_args],
            out_specs=batched(A + 1),
            out_shape=jax.ShapeDtypeStruct((B, A + 1), jnp.float32),
            compiler_params=cparams,
            cost_estimate=pl.CostEstimate(flops=flops,
                                          transcendentals=transcendentals,
                                          bytes_accessed=bytes_accessed),
        )(obs, eps, *w_args)
        # Split the packed lane-contiguous slab outside the kernel (static slices).
        return packed[:, :A], packed[:, A:A + 1]

    # ----- eval: slimmed kernel, no log_std / eps / log_prob work at all -----
    w_args = (kparams["w1"], kparams["b1"], kparams["w2"], kparams["b2"],
              kparams["w3_mean"], kparams["b3_mean"])

    flops = 2 * B * (S * H + H * H + H * A)
    transcendentals = B * A  # tanh
    bytes_accessed = nbytes(obs, *w_args) + B * A * 4

    action = pl.pallas_call(
        _actor_eval_kernel,
        grid=grid,
        in_specs=[batched(S)] + [resident(a) for a in w_args],
        out_specs=batched(A),
        out_shape=jax.ShapeDtypeStruct((B, A), jnp.float32),
        compiler_params=cparams,
        cost_estimate=pl.CostEstimate(flops=flops,
                                      transcendentals=transcendentals,
                                      bytes_accessed=bytes_accessed),
    )(obs, *w_args)
    return action, None


# ----------------------------------------------------------------------------
# Params (f32 reference layout + packed kernel layout)
# ----------------------------------------------------------------------------
def init_actor_params(key, state_dim, action_dim, hidden=128):
    """nn.Linear-style U(-1/sqrt(fan_in), 1/sqrt(fan_in)) init.
    Weights stored (in, out); biases (1, out); head unsplit (out = 2*A)."""
    ks = jax.random.split(key, 6)

    def linear(kw, kb, fan_in, fan_out):
        bound = 1.0 / math.sqrt(fan_in)
        w = jax.random.uniform(kw, (fan_in, fan_out), jnp.float32, -bound, bound)
        b = jax.random.uniform(kb, (1, fan_out), jnp.float32, -bound, bound)
        return w, b

    w1, b1 = linear(ks[0], ks[1], state_dim, hidden)
    w2, b2 = linear(ks[2], ks[3], hidden, hidden)
    w3, b3 = linear(ks[4], ks[5], hidden, 2 * action_dim)
    return dict(w1=w1, b1=b1, w2=w2, b2=b2, w3=w3, b3=b3)


def pack_kernel_params(params):
    """Convert f32 reference params into the kernel layout:
       * matmul weights in bf16 (single-pass MXU on v5e/v6e/v7x, half the DMA),
       * biases kept f32 (all VPU math stays f32; v5e has no bf16 VPU),
       * head fused into one (H, H+A) RHS: mean columns at lanes [0, A),
         log_std columns at lanes [H, H+A) -> vreg-column-aligned slices,
       * mean-only head kept separately for the slimmed eval kernel.
    """
    w2, w3, b3 = params["w2"], params["w3"], params["b3"]
    H = w2.shape[1]
    A = b3.shape[1] // 2

    w3_head = jnp.zeros((H, H + A), jnp.float32)
    w3_head = w3_head.at[:, :A].set(w3[:, :A]).at[:, H:H + A].set(w3[:, A:])
    b3_head = jnp.zeros((1, H + A), jnp.float32)
    b3_head = b3_head.at[:, :A].set(b3[:, :A]).at[:, H:H + A].set(b3[:, A:])

    return dict(
        w1=params["w1"].astype(jnp.bfloat16), b1=params["b1"],
        w2=w2.astype(jnp.bfloat16), b2=params["b2"],
        w3_head=w3_head.astype(jnp.bfloat16), b3_head=b3_head,
        w3_mean=w3[:, :A].astype(jnp.bfloat16), b3_mean=b3[:, :A],
    )


# ----------------------------------------------------------------------------
# Pure-JAX reference
# ----------------------------------------------------------------------------
def _reference_forward(obs, params, eps, training, matmul_dtype=jnp.float32):
    """matmul_dtype=jnp.float32  -> faithful f32 PyTorch-equivalent reference.
       matmul_dtype=jnp.bfloat16 -> matmul operands rounded like the kernel
       (f32 accumulation, f32 epilogue) for a tight bit-level-ish comparison."""
    if matmul_dtype == jnp.float32:
        def mm(x, w):
            return jnp.dot(x, w, precision=jax.lax.Precision.HIGHEST)
    else:
        def mm(x, w):
            return jnp.dot(x.astype(matmul_dtype), w.astype(matmul_dtype),
                           preferred_element_type=jnp.float32)

    A = params["b3"].shape[1] // 2
    h = jax.nn.relu(mm(obs, params["w1"]) + params["b1"])
    h = jax.nn.relu(mm(h, params["w2"]) + params["b2"])
    out = mm(h, params["w3"]) + params["b3"]
    mean, log_std = out[:, :A], out[:, A:]
    log_std = jnp.clip(log_std, LOG_STD_MIN, LOG_STD_MAX)
    if not training:
        return jnp.tanh(mean), None
    std = jnp.exp(log_std)
    pre_tanh = mean + std * eps
    action = jnp.tanh(pre_tanh)
    normal_lp = -0.5 * ((pre_tanh - mean) / std) ** 2 - log_std - _HALF_LOG_2PI
    log_det = (2.0 * _LOG_2
               + jax.nn.log_sigmoid(2.0 * pre_tanh)
               + jax.nn.log_sigmoid(-2.0 * pre_tanh))
    log_prob = jnp.sum(normal_lp - log_det, axis=1, keepdims=True)
    return action, log_prob


# ----------------------------------------------------------------------------
# Demo / self-test
# ----------------------------------------------------------------------------
if __name__ == "__main__":
    key = jax.random.PRNGKey(0)
    k_param, k_obs, k_eps, k_obs2, k_eps2 = jax.random.split(key, 5)

    state_dim, action_dim, batch = 20, 7, 8
    params = init_actor_params(k_param, state_dim, action_dim)
    kparams = pack_kernel_params(params)

    obs = jax.random.normal(k_obs, (batch, state_dim), jnp.float32)
    eps = jax.random.normal(k_eps, (batch, action_dim), jnp.float32)

    # Training path: stochastic action + per-sample log_prob.
    action, log_prob = actor_forward(obs, kparams, eps=eps, training=True)
    jax.block_until_ready(action)
    jax.block_until_ready(log_prob)
    assert action.shape == (batch, action_dim) and log_prob.shape == (batch, 1)

    # Tight check vs a reference using the same bf16-operand / f32-accum matmuls.
    ref_a16, ref_lp16 = _reference_forward(obs, params, eps, True, matmul_dtype=jnp.bfloat16)
    np.testing.assert_allclose(np.asarray(action), np.asarray(ref_a16), rtol=2e-3, atol=2e-3)
    np.testing.assert_allclose(np.asarray(log_prob), np.asarray(ref_lp16), rtol=2e-3, atol=2e-3)

    # Loose check vs the full-f32 reference (bounds the bf16 operand rounding).
    ref_a, ref_lp = _reference_forward(obs, params, eps, True)
    np.testing.assert_allclose(np.asarray(action), np.asarray(ref_a), rtol=5e-2, atol=5e-2)
    np.testing.assert_allclose(np.asarray(log_prob), np.asarray(ref_lp), rtol=5e-2, atol=1e-1)

    # Eval path: deterministic tanh(mean), no log_prob (slimmed kernel).
    action_eval, lp_eval = actor_forward(obs, kparams, training=False)
    jax.block_until_ready(action_eval)
    assert lp_eval is None
    ref_ae16, _ = _reference_forward(obs, params, None, False, matmul_dtype=jnp.bfloat16)
    np.testing.assert_allclose(np.asarray(action_eval), np.asarray(ref_ae16), rtol=2e-3, atol=2e-3)

    # Larger batch: exercises the 2-block balanced tiled grid and a masked
    # remainder block (1000 rows -> TB=504, grid=(2,), last block 496 valid rows).
    big_b = 1000
    obs_big = jax.random.normal(k_obs2, (big_b, state_dim), jnp.float32)
    eps_big = jax.random.normal(k_eps2, (big_b, action_dim), jnp.float32)
    a_big, lp_big = actor_forward(obs_big, kparams, eps=eps_big, training=True)
    jax.block_until_ready(a_big)
    rb_a16, rb_lp16 = _reference_forward(obs_big, params, eps_big, True, matmul_dtype=jnp.bfloat16)
    np.testing.assert_allclose(np.asarray(a_big), np.asarray(rb_a16), rtol=2e-3, atol=2e-3)
    np.testing.assert_allclose(np.asarray(lp_big), np.asarray(rb_lp16), rtol=2e-3, atol=2e-3)

    print("KERNEL_OK")
</pallas_src>

<mosaic_0001>
module attributes {stable_mosaic.version = 11 : i64} {
  func.func @_actor_train_kernel(%arg0: i32, %arg1: memref<8x20xf32, #tpu.memory_space<vmem>>, %arg2: memref<8x7xf32, #tpu.memory_space<vmem>>, %arg3: memref<20x128xbf16, #tpu.memory_space<vmem>>, %arg4: memref<1x128xf32, #tpu.memory_space<vmem>>, %arg5: memref<128x128xbf16, #tpu.memory_space<vmem>>, %arg6: memref<1x128xf32, #tpu.memory_space<vmem>>, %arg7: memref<128x135xbf16, #tpu.memory_space<vmem>>, %arg8: memref<1x135xf32, #tpu.memory_space<vmem>>, %arg9: memref<8x8xf32, #tpu.memory_space<vmem>>) attributes {dimension_semantics = [#tpu.dimension_semantics<parallel>], iteration_bounds = array<i64: 1>, scalar_prefetch = 0 : i64, scratch_operands = 0 : i64, tpu.core_type = #tpu.core_type<tc>, window_params = [{transform_indices = @transform_0, window_bounds = array<i64: 8, 20>}, {transform_indices = @transform_1, window_bounds = array<i64: 8, 7>}, {pipeline_mode = #tpu.pipeline_mode<synchronous>, transform_indices = @transform_2, window_bounds = array<i64: 20, 128>}, {pipeline_mode = #tpu.pipeline_mode<synchronous>, transform_indices = @transform_3, window_bounds = array<i64: 1, 128>}, {pipeline_mode = #tpu.pipeline_mode<synchronous>, transform_indices = @transform_4, window_bounds = array<i64: 128, 128>}, {pipeline_mode = #tpu.pipeline_mode<synchronous>, transform_indices = @transform_5, window_bounds = array<i64: 1, 128>}, {pipeline_mode = #tpu.pipeline_mode<synchronous>, transform_indices = @transform_6, window_bounds = array<i64: 128, 135>}, {pipeline_mode = #tpu.pipeline_mode<synchronous>, transform_indices = @transform_7, window_bounds = array<i64: 1, 135>}, {transform_indices = @transform_8, window_bounds = array<i64: 8, 8>}]} {
    %c0 = arith.constant 0 : index
    %c0_0 = arith.constant 0 : index
    %0 = vector.load %arg1[%c0, %c0_0] : memref<8x20xf32, #tpu.memory_space<vmem>>, vector<8x20xf32>
    %1 = arith.truncf %0 : vector<8x20xf32> to vector<8x20xbf16>
    %c0_1 = arith.constant 0 : index
    %c0_2 = arith.constant 0 : index
    %2 = vector.load %arg3[%c0_1, %c0_2] : memref<20x128xbf16, #tpu.memory_space<vmem>>, vector<20x128xbf16>
    %cst = arith.constant dense<0.000000e+00> : vector<8x128xf32>
    %3 = tpu.matmul %1, %2, %cst {dimension_numbers = #tpu.dot_dimension_numbers<[1], [0], [0], [1], [0, 0, 1, 1], [], []>} : vector<8x20xbf16>, vector<20x128xbf16>, vector<8x128xf32> -> vector<8x128xf32>
    %c0_3 = arith.constant 0 : index
    %c0_4 = arith.constant 0 : index
    %4 = vector.load %arg4[%c0_3, %c0_4] : memref<1x128xf32, #tpu.memory_space<vmem>>, vector<1x128xf32>
    %5 = vector.broadcast %4 : vector<1x128xf32> to vector<8x128xf32>
    %6 = arith.addf %3, %5 : vector<8x128xf32>
    %cst_5 = arith.constant 0.000000e+00 : f32
    %7 = vector.broadcast %cst_5 : f32 to vector<8x128xf32>
    %8 = arith.maximumf %6, %7 : vector<8x128xf32>
    %9 = arith.truncf %8 : vector<8x128xf32> to vector<8x128xbf16>
    %c0_6 = arith.constant 0 : index
    %c0_7 = arith.constant 0 : index
    %10 = vector.load %arg5[%c0_6, %c0_7] : memref<128x128xbf16, #tpu.memory_space<vmem>>, vector<128x128xbf16>
    %cst_8 = arith.constant dense<0.000000e+00> : vector<8x128xf32>
    %11 = tpu.matmul %9, %10, %cst_8 {dimension_numbers = #tpu.dot_dimension_numbers<[1], [0], [0], [1], [0, 0, 1, 1], [], []>} : vector<8x128xbf16>, vector<128x128xbf16>, vector<8x128xf32> -> vector<8x128xf32>
    %c0_9 = arith.constant 0 : index
    %c0_10 = arith.constant 0 : index
    %12 = vector.load %arg6[%c0_9, %c0_10] : memref<1x128xf32, #tpu.memory_space<vmem>>, vector<1x128xf32>
    %13 = vector.broadcast %12 : vector<1x128xf32> to vector<8x128xf32>
    %14 = arith.addf %11, %13 : vector<8x128xf32>
    %cst_11 = arith.constant 0.000000e+00 : f32
    %15 = vector.broadcast %cst_11 : f32 to vector<8x128xf32>
    %16 = arith.maximumf %14, %15 : vector<8x128xf32>
    %17 = arith.truncf %16 : vector<8x128xf32> to vector<8x128xbf16>
    %c0_12 = arith.constant 0 : index
    %c0_13 = arith.constant 0 : index
    %18 = vector.load %arg7[%c0_12, %c0_13] : memref<128x135xbf16, #tpu.memory_space<vmem>>, vector<128x135xbf16>
    %cst_14 = arith.constant dense<0.000000e+00> : vector<8x135xf32>
    %19 = tpu.matmul %17, %18, %cst_14 {dimension_numbers = #tpu.dot_dimension_numbers<[1], [0], [0], [1], [0, 0, 1, 1], [], []>} : vector<8x128xbf16>, vector<128x135xbf16>, vector<8x135xf32> -> vector<8x135xf32>
    %c0_15 = arith.constant 0 : index
    %c0_16 = arith.constant 0 : index
    %20 = vector.load %arg8[%c0_15, %c0_16] : memref<1x135xf32, #tpu.memory_space<vmem>>, vector<1x135xf32>
    %21 = vector.broadcast %20 : vector<1x135xf32> to vector<8x135xf32>
    %22 = arith.addf %19, %21 : vector<8x135xf32>
    %23 = vector.extract_strided_slice %22 {offsets = [0, 0], sizes = [8, 7], strides = [1, 1]} : vector<8x135xf32> to vector<8x7xf32>
    %24 = vector.extract_strided_slice %22 {offsets = [0, 128], sizes = [8, 7], strides = [1, 1]} : vector<8x135xf32> to vector<8x7xf32>
    %cst_17 = arith.constant -2.000000e+01 : f32
    %cst_18 = arith.constant 2.000000e+00 : f32
    %25 = vector.broadcast %cst_17 : f32 to vector<8x7xf32>
    %26 = arith.maximumf %25, %24 : vector<8x7xf32>
    %27 = vector.broadcast %cst_18 : f32 to vector<8x7xf32>
    %28 = arith.minimumf %27, %26 : vector<8x7xf32>
    %29 = math.exp %28 : vector<8x7xf32>
    %c0_19 = arith.constant 0 : index
    %c0_20 = arith.constant 0 : index
    %30 = vector.load %arg2[%c0_19, %c0_20] : memref<8x7xf32, #tpu.memory_space<vmem>>, vector<8x7xf32>
    %31 = arith.mulf %29, %30 : vector<8x7xf32>
    %32 = arith.addf %23, %31 : vector<8x7xf32>
    %33 = math.tanh %32 : vector<8x7xf32>
    %cst_21 = arith.constant -5.000000e-01 : f32
    %34 = vector.broadcast %cst_21 : f32 to vector<8x7xf32>
    %35 = arith.mulf %34, %30 : vector<8x7xf32>
    %36 = arith.mulf %35, %30 : vector<8x7xf32>
    %37 = arith.subf %36, %28 : vector<8x7xf32>
    %cst_22 = arith.constant 0.918938517 : f32
    %38 = vector.broadcast %cst_22 : f32 to vector<8x7xf32>
    %39 = arith.subf %37, %38 : vector<8x7xf32>
    %cst_23 = arith.constant 0.693147182 : f32
    %40 = vector.broadcast %cst_23 : f32 to vector<8x7xf32>
    %41 = arith.subf %40, %32 : vector<8x7xf32>
    %cst_24 = arith.constant -2.000000e+00 : f32
    %42 = vector.broadcast %cst_24 : f32 to vector<8x7xf32>
    %43 = arith.mulf %42, %32 : vector<8x7xf32>
    %cst_25 = arith.constant 0.000000e+00 : f32
    %44 = vector.broadcast %cst_25 : f32 to vector<8x7xf32>
    %45 = arith.maximumf %44, %43 : vector<8x7xf32>
    %46 = vector.broadcast %cst_25 : f32 to vector<8x7xf32>
    %47 = arith.subf %46, %43 : vector<8x7xf32>
    %48 = arith.cmpf one, %47, %47 : vector<8x7xf32>
    %49 = vector.broadcast %cst_25 : f32 to vector<8x7xf32>
    %50 = arith.addf %49, %43 : vector<8x7xf32>
    %51 = math.absf %47 : vector<8x7xf32>
    %cst_26 = arith.constant 0.000000e+00 : f32
    %52 = vector.broadcast %cst_26 : f32 to vector<8x7xf32>
    %53 = arith.subf %52, %51 : vector<8x7xf32>
    %54 = math.exp %53 : vector<8x7xf32>
    %55 = math.log1p %54 : vector<8x7xf32>
    %56 = arith.addf %45, %55 : vector<8x7xf32>
    %57 = arith.select %48, %50, %56 : vector<8x7xi1>, vector<8x7xf32>
    %58 = arith.subf %41, %57 : vector<8x7xf32>
    %cst_27 = arith.constant 2.000000e+00 : f32
    %59 = vector.broadcast %cst_27 : f32 to vector<8x7xf32>
    %60 = arith.mulf %59, %58 : vector<8x7xf32>
    %61 = arith.subf %39, %60 : vector<8x7xf32>
    %cst_28 = arith.constant dense<0.000000e+00> : vector<8xf32>
    %62 = vector.multi_reduction <add>, %61, %cst_28 [1] : vector<8x7xf32> to vector<8xf32>
    %63 = vector.shape_cast %62 : vector<8xf32> to vector<8x1xf32>
    %64 = tpu.concatenate %33, %63 in 1 : vector<8x7xf32>, vector<8x1xf32> -> vector<8x8xf32>
    %c0_29 = arith.constant 0 : index
    %c0_30 = arith.constant 0 : index
    %65 = vector.load %arg9[%c0_29, %c0_30] : memref<8x8xf32, #tpu.memory_space<vmem>>, vector<8x8xf32>
    tpu.vector_store %arg9[%c0_29, %c0_30], %64 {strides = array<i32>} : memref<8x8xf32, #tpu.memory_space<vmem>>, vector<8x8xf32>,
    return
  }
  func.func @transform_0(%arg0: i32) -> (i32, i32) {
    %c0_i32 = arith.constant 0 : i32
    %c0_i32_0 = arith.constant 0 : i32
    return %arg0, %c0_i32 : i32, i32
  }
  func.func @transform_1(%arg0: i32) -> (i32, i32) {
    %c0_i32 = arith.constant 0 : i32
    %c0_i32_0 = arith.constant 0 : i32
    return %arg0, %c0_i32 : i32, i32
  }
  func.func @transform_2(%arg0: i32) -> (i32, i32) {
    %c0_i32 = arith.constant 0 : i32
    %c0_i32_0 = arith.constant 0 : i32
    %c0_i32_1 = arith.constant 0 : i32
    return %c0_i32, %c0_i32_0 : i32, i32
  }
  func.func @transform_3(%arg0: i32) -> (i32, i32) {
    %c0_i32 = arith.constant 0 : i32
    %c0_i32_0 = arith.constant 0 : i32
    %c0_i32_1 = arith.constant 0 : i32
    return %c0_i32, %c0_i32_0 : i32, i32
  }
  func.func @transform_4(%arg0: i32) -> (i32, i32) {
    %c0_i32 = arith.constant 0 : i32
    %c0_i32_0 = arith.constant 0 : i32
    %c0_i32_1 = arith.constant 0 : i32
    return %c0_i32, %c0_i32_0 : i32, i32
  }
  func.func @transform_5(%arg0: i32) -> (i32, i32) {
    %c0_i32 = arith.constant 0 : i32
    %c0_i32_0 = arith.constant 0 : i32
    %c0_i32_1 = arith.constant 0 : i32
    return %c0_i32, %c0_i32_0 : i32, i32
  }
  func.func @transform_6(%arg0: i32) -> (i32, i32) {
    %c0_i32 = arith.constant 0 : i32
    %c0_i32_0 = arith.constant 0 : i32
    %c0_i32_1 = arith.constant 0 : i32
    return %c0_i32, %c0_i32_0 : i32, i32
  }
  func.func @transform_7(%arg0: i32) -> (i32, i32) {
    %c0_i32 = arith.constant 0 : i32
    %c0_i32_0 = arith.constant 0 : i32
    %c0_i32_1 = arith.constant 0 : i32
    return %c0_i32, %c0_i32_0 : i32, i32
  }
  func.func @transform_8(%arg0: i32) -> (i32, i32) {
    %c0_i32 = arith.constant 0 : i32
    %c0_i32_0 = arith.constant 0 : i32
    return %arg0, %c0_i32 : i32, i32
  }
}

</mosaic_0001>

<bundles_post_ra>
// kernel: tpu_custom_call.1
= control target key start
LH: loop header
LB: loop body
LE: loop exit
PB: predicated region body
PF: predicated region fallthrough
CT: control target
= control target key end

     0   :  { %v561_v1 = vmov 0.0   ;;  %vm56_vm0 = vcmask 1041408   ;;  %vm562_vm1 = vmmov 0   ;;  %vm52_vm2 = vcmask 162816   ;;  %s715_s0 = inlined_call_operand.vmem [shape: f32[8,20], index: 0, kind: input, shape index: {}]   ;;  %s716_s1 = inlined_call_operand.vmem [shape: f32[8,7], index: 1, kind: input, shape index: {}]   ;;  %s717_s2 = inlined_call_operand.vmem [shape: bf16[20,128], index: 2, kind: input, shape index: {}]   ;;  %s718_s3 = inlined_call_operand.vmem [shape: f32[1,128], index: 3, kind: input, shape index: {}]   ;;  %s719_s4 = inlined_call_operand.vmem [shape: bf16[128,128], index: 4, kind: input, shape index: {}]   ;;  %s720_s5 = inlined_call_operand.vmem [shape: f32[1,128], index: 5, kind: input, shape index: {}]   ;;  %s721_s6 = inlined_call_operand.vmem [shape: bf16[128,135], index: 6, kind: input, shape index: {}]   ;;  %s722_s7 = inlined_call_operand.vmem [shape: f32[1,135], index: 7, kind: input, shape index: {}]   ;;  %s723_s8 = inlined_call_operand.hbm [shape: f32[8,8], index: 8, kind: output, shape index: {}]  }
   0x1   :  { %v495_v0 = vld [vmem:[%s717_s2] sm:$0xff]   ;;  %463 = vmatprep.subr.bf16.mxu0 %v561_v1  ;;  %v496_v2 = vld [vmem:[%s717_s2 + $0x8] ss:$0 sps:$4 sm:$0x33]   ;;  %471 = vmatprep.subr.bf16.mxu1 %v561_v1  ;;  %v499_v8 = vld [vmem:[%s719_s4 + $0x10] sm:$0xff]  }
   0x2   :  { %464 = vmatpush3.bf16.msra.mxu0 %v495_v0  ;;  %v31_v3 = vld [vmem:[%s715_s0] sm:$0xff]  ;;  %v58_v5 = vsel %vm56_vm0, %v496_v2, 0  ;;  %467 = vmatprep.mubr.msk.bf16.mxu0 %vm562_vm1, %v561_v1  ;;  %v498_v6 = vld [vmem:[%s719_s4 + $0x8] sm:$0xff]   ;;  %v500_v9 = vld [vmem:[%s719_s4 + $0x18] sm:$0xff]  }
   0x3   :  { %v497_v4 = vld [vmem:[%s719_s4] sm:$0xff]   ;;  %465 = vmatprep.subr.bf16.mxu0 %v561_v1  ;;  %487 = vmatprep.mubr.msk.bf16.mxu1 %vm562_vm1, %v561_v1  ;;  %v32_v7 = vpack.c.bf16 %v31_v3, %v31_v3 }
   0x4   :  { %472 = vmatpush3.bf16.msra.mxu1 %v497_v4 }
   0x5   :  { %473 = vmatprep.subr.bf16.mxu1 %v561_v1 }
   0x6   :  { %466 = vmatpush3.bf16.msra.mxu0 %v58_v5 }
   0x8   :  { %474 = vmatpush3.bf16.msra.mxu1 %v498_v6 }
   0x9   :  { %468 = vmatmul.mubr.msk.bf16.vlgmr.msra.gmra.mrb[0].mxu0 %vm52_vm2, %v32_v7  ;;  %475 = vmatprep.subr.bf16.mxu1 %v561_v1 }
   0xc   :  { %476 = vmatpush3.bf16.msra.mxu1 %v499_v8 }
   0xd   :  { %477 = vmatprep.subr.bf16.mxu1 %v561_v1 }
   0xe   :  { %13 = vsyncpa [#allocation3], 0  ;;  %v501_v10 = vld [vmem:[%s719_s4 + $0x20] sm:$0xff]   ;;  %v502_v11 = vld [vmem:[%s719_s4 + $0x28] sm:$0xff]   ;;  %v563_v38 = vmov 0   ;;  %v233_v47 = vlaneseq  ;;  %vm400_vm5 = vcmask 56320  }
   0xf   :  { %v503_v12 = vld [vmem:[%s719_s4 + $0x30] sm:$0xff]   ;;  %v504_v13 = vld [vmem:[%s719_s4 + $0x38] sm:$0xff]   ;;  %v505_v14 = vld [vmem:[%s721_s6] ss:$8 sps:$4 sm:$0xff]   ;;  %355 = vmatprep.mubr.bf16.mxu0 %v563_v38  ;;  %vm405_vm6 = vcmask 64512  }
  0x10   :  { %478 = vmatpush3.bf16.msra.mxu1 %v500_v9  ;;  %v507_v15 = vld [vmem:[%s721_s6 + $0x4] ss:$8 sps:$4 sm:$0xff]   ;;  %v510_v16 = vld [vmem:[%s721_s6 + $0x14] ss:$8 sps:$4 sm:$0xff]   ;;  %v508_v17 = vld [vmem:[%s721_s6 + $0x10] ss:$8 sps:$4 sm:$0xff]  }
  0x11   :  { %479 = vmatprep.subr.bf16.mxu1 %v561_v1  ;;  %323 = vmatprep.subr.bf16.mxu0 %v507_v15  ;;  %v513_v18 = vld [vmem:[%s721_s6 + $0x24] ss:$8 sps:$4 sm:$0xff]   ;;  %v511_v19 = vld [vmem:[%s721_s6 + $0x20] ss:$8 sps:$4 sm:$0xff]   ;;  %v516_v20 = vld [vmem:[%s721_s6 + $0x34] ss:$8 sps:$4 sm:$0xff]  }
  0x12   :  { %324 = vmatpush1.bf16.msra.mxu0 %v505_v14  ;;  %v514_v21 = vld [vmem:[%s721_s6 + $0x30] ss:$8 sps:$4 sm:$0xff]   ;;  %v519_v22 = vld [vmem:[%s721_s6 + $0x44] ss:$8 sps:$4 sm:$0xff]   ;;  %v517_v23 = vld [vmem:[%s721_s6 + $0x40] ss:$8 sps:$4 sm:$0xff]  }
  0x13   :  { %325 = vmatprep.subr.bf16.mxu0 %v510_v16  ;;  %v522_v24 = vld [vmem:[%s721_s6 + $0x54] ss:$8 sps:$4 sm:$0xff]   ;;  %v520_v25 = vld [vmem:[%s721_s6 + $0x50] ss:$8 sps:$4 sm:$0xff]   ;;  %v525_v26 = vld [vmem:[%s721_s6 + $0x64] ss:$8 sps:$4 sm:$0xff]  }
  0x14   :  { %480 = vmatpush3.bf16.msra.mxu1 %v501_v10  ;;  %v523_v27 = vld [vmem:[%s721_s6 + $0x60] ss:$8 sps:$4 sm:$0xff]   ;;  %v528_v36 = vld [vmem:[%s721_s6 + $0x74] ss:$8 sps:$4 sm:$0xff]   ;;  %v526_v37 = vld [vmem:[%s721_s6 + $0x70] ss:$8 sps:$4 sm:$0xff]  }
  0x15   :  { %481 = vmatprep.subr.bf16.mxu1 %v561_v1  ;;  %v421_v28 = vld [vmem:[%s718_s3] ss:$0 sm:$0xff]  ;;  %v234_v48 = vshrl.u32 %v233_v47, 7 }
  0x16   :  { %326 = vmatpush1.bf16.msra.mxu0 %v508_v17  ;;  %v425_v39 = vld [vmem:[%s720_s5] ss:$0 sm:$0xff] }
  0x17   :  { %327 = vmatprep.subr.bf16.mxu0 %v513_v18  ;;  %v239_v49 = vsub.s32 1, %v234_v48  ;;  %v231_v50 = vld [vmem:[%s722_s7] sm:$0x3]  ;;  %v235_v60 = vsub.s32 0, %v234_v48 }
  0x18   :  { %482 = vmatpush3.bf16.msra.mxu1 %v502_v11  ;;  %v368_v63 = vld [vmem:[%s716_s1] sm:$0xff]  ;;  %s564_s1 = smov [#allocation2]  }
  0x19   :  { %483 = vmatprep.subr.bf16.mxu1 %v561_v1  ;;  %v240_v51 = vrot.slane %v231_v50, %v239_v49  ;;  %v236_v61 = vrot.slane %v231_v50, %v235_v60  ;;  %v372_v11 = vmul.f32 -0.5, %v368_v63  ;;  %s413_s7 = sshll.u32 %s564_s1, 4  ;;  %s414_s7 = int_to_ptr.vmem [resolvable:$true] %s413_s7 }
  0x1a   :  { %328 = vmatpush1.bf16.msra.mxu0 %v511_v19  ;;  %s537_s14 = scalar_lea.vmem %s414_s7, 128  ;;  %p542_p1 = scmp.lt.s32.totalorder %s414_s7, %s414_s7 }
  0x1b   :  { %329 = vmatprep.subr.bf16.mxu0 %v516_v20  ;;  %v373_v15 = vmul.f32 %v372_v11, %v368_v63  ;;  %p538_p0 = scmp.ne.s32.totalorder %s414_s7, %s537_s14  ;;  %p543_p2 = scmp.lt.s32.totalorder %s537_s14, %s537_s14 }
  0x1c   :  { %484 = vmatpush3.bf16.msra.mxu1 %v503_v12 }
  0x1d   :  { %485 = vmatprep.subr.bf16.mxu1 %v561_v1  ;;  %p544_p3 = por %p543_p2, %p542_p1 }
  0x1e   :  { %330 = vmatpush1.bf16.msra.mxu0 %v514_v21 }
  0x1f   :  { %331 = vmatprep.subr.bf16.mxu0 %v519_v22  ;;  %p545_p4 = pnand %p544_p3, %p538_p0 }
  0x20   :  { %486 = vmatpush3.bf16.msra.mxu1 %v504_v13 }
  0x22   :  { %332 = vmatpush1.bf16.msra.mxu0 %v517_v23 }
  0x23   :  { %333 = vmatprep.subr.bf16.mxu0 %v522_v24 }
  0x26   :  { %334 = vmatpush1.bf16.msra.mxu0 %v520_v25 }
  0x27   :  { %335 = vmatprep.subr.bf16.mxu0 %v525_v26 }
  0x2a   :  { %336 = vmatpush1.bf16.msra.mxu0 %v523_v27 }
  0x2b   :  { %337 = vmatprep.subr.bf16.mxu0 %v528_v36 }
  0x2e   :  { %338 = vmatpush1.bf16.msra.mxu0 %v526_v37 }
  0xdc   :  { %v94_v29 = vpop.f32.mrb[0].mxu0 }
  0xdd   :  { %v95_v30 = vadd.f32 %v421_v28, %v94_v29  ;;  %v469_v31 = vpop.f32.mrb[1].mxu0 }
  0xde   :  { %v97_v32 = vpop.f32.mrb[2].mxu0 }
  0xdf   :  { %v100_v33 = vmax.f32 %v95_v30, 0.0  ;;  %v470_v34 = vpop.f32.mrb[3].mxu0 }
  0xe1   :  { %v101_v35 = vpack.c.bf16 %v100_v33, %v100_v33 }
  0xe3   :  { %488 = vmatmul.mubr.bf16.vlgmr.msra.gmra.mrb[0].mxu1 %v101_v35 }
 0x1b6   :  { %v207_v40 = vpop.f32.mrb[0].mxu1 }
 0x1b7   :  { %v208_v41 = vadd.f32 %v425_v39, %v207_v40  ;;  %v489_v42 = vpop.f32.mrb[1].mxu1 }
 0x1b8   :  { %v210_v43 = vpop.f32.mrb[2].mxu1 }
 0x1b9   :  { %v213_v44 = vmax.f32 %v208_v41, 0.0  ;;  %v490_v45 = vpop.f32.mrb[3].mxu1 }
 0x1bb   :  { %v214_v46 = vpack.c.bf16 %v213_v44, %v213_v44 }
 0x1bd   :  { %356 = vmatmul.mubr.bf16.vlgmr.msra.gmra.mrb[4].mxu0 %v214_v46 }
 0x290   :  { %v357_v52 = vpop.f32.mrb[4].mxu0 }
 0x291   :  { %v359_v53 = vpop.f32.mrb[5].mxu0  ;;  %v358_v0 = vadd.f32 %v357_v52, %v236_v61 }
 0x292   :  { %v360_v54 = vadd.f32 %v359_v53, %v240_v51  ;;  %v361_v55 = vpop.f32.mrb[6].mxu0 }
 0x293   :  { %v362_v56 = vpop.f32.mrb[7].mxu0 }
 0x294   :  { %v364_v57 = vmax.f32 %v360_v54, -20.0 }
 0x296   :  { %v365_v58 = vmin.f32 %v364_v57, 2.0 }
 0x298   :  { %v366_v59 = vmul.f32 1.442695, %v365_v58  ;;  %v374_v21 = vsub.f32 %v373_v15, %v365_v58 }
 0x29a   :  { %529 = vpow2.f32 %v366_v59  ;;  %v450_v25 = vadd.f32 -0.9189385, %v374_v21 }
 0x2a4   :  { %v530_v62 = vpop.eup %529 }
 0x2a5   :  { %v369_v1 = vmul.f32 %v530_v62, %v368_v63 }
 0x2a7   :  { %v370_v2 = vadd.f32 %v369_v1, %v358_v0 }
 0x2a9   :  { %v377_v3 = vmul.f32 -2.0, %v370_v2  ;;  %v376_v22 = vsub.f32 0.6931472, %v370_v2 }
 0x2ab   :  { %v379_v4 = vsub.f32 0.0, %v377_v3  ;;  %v378_v18 = vmax.f32 %v377_v3, 0.0 }
 0x2ad   :  { %v382_v5 = vand.u32 2147483647, %v379_v4  ;;  %vm380_vm4 = vcmp.ne.f32.partialorder %v379_v4, %v379_v4 }
 0x2af   :  { %v383_v6 = vsub.f32 0.0, %v382_v5 }
 0x2b1   :  { %v384_v7 = vmul.f32 1.442695, %v383_v6 }
 0x2b3   :  { %531 = vpow2.f32 %v384_v7 }
 0x2bd   :  { %v532_v8 = vpop.eup %531 }
 0x2be   :  { %v386_v9 = vadd.f32 1.0, %v532_v8  ;;  %v389_v10 = vmul.f32 -0.5, %v532_v8  ;;  %v392_v13 = vand.u32 2147483647, %v532_v8 }
 0x2c0   :  { %533 = vlog2.f32 %v386_v9  ;;  %v390_v12 = vadd.f32 1.0, %v389_v10  ;;  %vm393_vm3 = vcmp.lt.f32.partialorder %v392_v13, 0.0004427343 }
 0x2c1   :  { %535 = vtanh.f32 %v370_v2 }
 0x2c2   :  { %v391_v17 = vmul.f32 %v532_v8, %v390_v12 }
 0x2ca   :  { %v534_v14 = vpop.eup %533 }
 0x2cb   :  { %v388_v16 = vmul.f32 0.6931472, %v534_v14  ;;  %v536_v29 = vpop.eup %535 }
 0x2cd   :  { %v394_v19 = vsel %vm393_vm3, %v391_v17, %v388_v16 }
 0x2ce   :  { %v395_v20 = vadd.f32 %v394_v19, %v378_v18 }
 0x2d0   :  { %v396_v23 = vsel %vm380_vm4, %v377_v3, %v395_v20 }
 0x2d1   :  { %v397_v24 = vsub.f32 %v376_v22, %v396_v23 }
 0x2d3   :  { %v398_v26 = vmul.f32 2.0, %v397_v24 }
 0x2d5   :  { %v399_v27 = vsub.f32 %v450_v25, %v398_v26 }
 0x2d7   :  { %v401_v28 = vsel %vm400_vm5, %v399_v27, 0.0 }
 0x2d8   :  { %402 = vadd.xlane.f32.xlu0 %v401_v28 }
 0x365   :  { %v403_v30 = vpop.xlane.xlu0 %402 }
 0x366   :  { %v404_v31 = vsel %vm400_vm5, %v536_v29, %v403_v30 }
 0x367   :  { %406 = vst.msk [vmem:[#allocation2] sm:$0xff] %vm405_vm6, %v404_v31 }
 0x368   :  { %548 = shalt.err (!%p545_p4)
}
 0x369   :  { %s549_s15 = scalar_lea.hbm %s723_s8, 128 }
 0x36a   :  { %p550_p5 = scmp.ne.s32.totalorder %s723_s8, %s549_s15  ;;  %p553_p6 = scmp.lt.u32.totalorder %s549_s15, %s723_s8 }
 0x36c   :  { %p555_p7 = pnand %p553_p6, %p550_p5 }
 0x36e   :  { %558 = shalt.err (!%p555_p7)
}
 0x36f   :  { %416 = dma.vmem_to_hbm [thread:$0]  %s414_s7, 128, %s723_s8, [#allocation3]  }
 0x370   :  { %559 = dma.done.wait [#allocation3], 128  }
 0x371   :  { %560 = vsyncadd [#allocation3], 4294967168 }
 0x372   :  { %420 = vsyncpa [#allocation3], 1 }

</bundles_post_ra>
